<compile_context>
chip_gen: v5e
topology: v5e:2x2
jax: 0.10.0
libtpu: 0.0.40
codegen_flags: <defaults>
</compile_context>

<pallas_src>
import jax
import jax.numpy as jnp
from jax.experimental import pallas as pl
from jax.experimental.pallas import tpu as pltpu


# ---------------------------------------------------------------------------
# Parameter construction (plain JAX init-time glue; matches
# nearest_neighbors_pre_elu with metric='cosine').
# ---------------------------------------------------------------------------
def nearest_neighbors_pre_elu(features: jnp.ndarray, k: int, i: float) -> jnp.ndarray:
    """kneighbors_graph(X, k, metric='cosine', mode='connectivity') + eye,
    then adj * i - i  (deterministic, dense).  Note: top_k tie-breaking may
    differ from sklearn; this only affects init, not the Pallas kernel."""
    norm = jnp.linalg.norm(features, axis=-1, keepdims=True)
    normed = features / jnp.maximum(norm, 1e-12)
    sim = normed @ normed.T                      # (N, N) cosine similarity
    dist = 1.0 - sim                             # cosine distance
    n = features.shape[0]
    dist = dist + jnp.eye(n, dtype=dist.dtype) * 1e9   # exclude self
    _, nbr_idx = jax.lax.top_k(-dist, k)         # (N, k)
    adj = jnp.zeros((n, n), dtype=jnp.float32)
    rows = jnp.repeat(jnp.arange(n), k)
    adj = adj.at[rows, nbr_idx.reshape(-1)].set(1.0)
    adj = adj + jnp.eye(n, dtype=jnp.float32)
    adj = adj * i - i
    return adj


# ---------------------------------------------------------------------------
# Pallas kernel: out = elu(Adj) + 1   (elementwise over the (N, N) matrix)
# ---------------------------------------------------------------------------
def _elu_plus_one_kernel(adj_ref, out_ref):
    # Compute in f32 (safe for bf16-stored Adj, incl. v5e's f32-only VPU);
    # exp and expm1 cost the same on the EUP, so where(x>0, x+1, exp(x))
    # saves one full-tile VALU add vs. where(x>0, x, expm1(x)) + 1.
    x = adj_ref[...].astype(jnp.float32)
    out_ref[...] = jnp.where(x > 0, x + 1.0, jnp.exp(x)).astype(out_ref.dtype)


# ---------------------------------------------------------------------------
# Tiling / VMEM budgeting helpers
# ---------------------------------------------------------------------------
def _vmem_capacity_bytes() -> int:
    """Per-core VMEM capacity; conservative (v7x per-TC = 64 MiB) fallback."""
    try:
        info = pltpu.get_tpu_info()
        cap = getattr(info, "vmem_capacity_bytes", None)
        if cap:
            return int(cap)
    except Exception:
        pass
    return 64 << 20


def _round_up(x: int, m: int) -> int:
    return ((x + m - 1) // m) * m


def _round_down(x: int, m: int) -> int:
    return max(m, (x // m) * m)


def _sublane_multiple(itemsize: int) -> int:
    # Native sublane packing: 8 rows for 4-byte, 16 for 2-byte, 32 for 1-byte.
    return max(8, 32 // max(1, itemsize))


def _budgets(itemsize_in: int, itemsize_out: int):
    """(max bytes per input tile, total live-buffer budget) from VMEM size."""
    vmem_cap = _vmem_capacity_bytes()
    live_budget = (vmem_cap * 3) // 4          # leave ~25% headroom for Mosaic
    # ~4 live tile buffers (double-buffered input + output); keep auto tiles
    # at 4-8 MiB on 64 MiB-VMEM parts (v7x) and up to 16 MiB on 128 MiB parts.
    max_tile = min(16 << 20, live_budget // 6)
    max_tile = max(4 << 20, max_tile)
    return max_tile, live_budget


def _choose_tiles(n_rows: int, n_cols: int, itemsize: int, *,
                  max_tile_bytes: int,
                  min_grid_steps: int = 8,
                  min_tile_bytes: int = 512 << 10):
    """Pick (row_tile, col_tile): full-width lane-dense columns when they fit
    the byte budget (contiguous HBM slabs, no masked column-edge stores),
    rows sized to the budget, with a minimum-grid-steps guard so the grid
    never collapses to a single step (keeps double-buffering alive and lets
    the 'parallel' leading axis be sharded across v7x's two TensorCores)."""
    sublane = _sublane_multiple(itemsize)

    # Column tile: prefer full width if one sublane-group of full rows fits.
    if n_cols * sublane * itemsize <= max_tile_bytes:
        col_tile = n_cols
    else:
        col_tile = 2048                    # large multiple of 128 -> unmasked vst
    col_steps = pl.cdiv(n_cols, col_tile)

    rows_fit = max_tile_bytes // max(1, col_tile * itemsize)
    if rows_fit >= n_rows:
        row_tile = n_rows                  # full-dim exception
    else:
        row_tile = _round_down(rows_fit, sublane)

    # Minimum-grid-steps guard: keep >= min_grid_steps tiles as long as each
    # tile stays >= min_tile_bytes (per-step overhead ~0.35 us is negligible
    # once a tile takes >~1 us of HBM time).
    total_steps = pl.cdiv(n_rows, row_tile) * col_steps
    if total_steps < min_grid_steps:
        needed_row_steps = pl.cdiv(min_grid_steps, col_steps)
        cand = _round_up(pl.cdiv(n_rows, needed_row_steps), sublane)
        min_rows = _round_up(pl.cdiv(min_tile_bytes, max(1, col_tile * itemsize)),
                             sublane)
        cand = max(cand, min_rows)
        if cand < row_tile:
            row_tile = cand
    return row_tile, col_tile, sublane


# ---------------------------------------------------------------------------
# Forward wrapper
# ---------------------------------------------------------------------------
def fgp_learner_forward(adj: jnp.ndarray, *, row_tile=None, col_tile=None,
                        out_dtype=None) -> jnp.ndarray:
    """Forward pass of FGP_learner (sparse=False): elu(Adj) + 1 via Pallas."""
    n_rows, n_cols = adj.shape
    out_dtype = adj.dtype if out_dtype is None else jnp.dtype(out_dtype)
    itemsize_in = jnp.dtype(adj.dtype).itemsize
    itemsize_out = jnp.dtype(out_dtype).itemsize
    max_tile_bytes, live_budget = _budgets(itemsize_in, itemsize_out)

    auto_rt, auto_ct, sublane = _choose_tiles(
        n_rows, n_cols, itemsize_in, max_tile_bytes=max_tile_bytes)
    rt = auto_rt if row_tile is None else int(row_tile)
    ct = auto_ct if col_tile is None else int(col_tile)

    # Clamp (possibly user-overridden) tiles so double-buffered input+output
    # plus ~4 MiB headroom always fits the per-core VMEM budget (v7x: 64 MiB).
    per_row_bytes = ct * 2 * (itemsize_in + itemsize_out)
    max_rows = max(sublane,
                   ((live_budget - (4 << 20)) // max(1, per_row_bytes)
                    // sublane) * sublane)
    if rt > max_rows:
        rt = max_rows

    grid = (pl.cdiv(n_rows, rt), pl.cdiv(n_cols, ct))

    live_bytes = rt * ct * 2 * (itemsize_in + itemsize_out)
    vmem_limit = max(32 << 20, live_bytes + (4 << 20))   # >= 32 MiB (v5e default 16)
    vmem_limit = min(vmem_limit, live_budget)             # <= per-core VMEM budget

    return pl.pallas_call(
        _elu_plus_one_kernel,
        out_shape=jax.ShapeDtypeStruct((n_rows, n_cols), out_dtype),
        grid_spec=pltpu.PrefetchScalarGridSpec(
            num_scalar_prefetch=0,
            grid=grid,
            in_specs=[pl.BlockSpec((rt, ct), lambda r, c: (r, c))],
            out_specs=pl.BlockSpec((rt, ct), lambda r, c: (r, c)),
        ),
        compiler_params=pltpu.CompilerParams(
            # Both axes independent -> leading axis sharded across TensorCores
            # on v7x megacore; reduction-free elementwise op.
            dimension_semantics=("parallel", "parallel"),
            vmem_limit_bytes=int(vmem_limit),
        ),
    )(adj)


# ---------------------------------------------------------------------------
# FGP_learner module equivalent
# ---------------------------------------------------------------------------
class FGPLearner:
    def __init__(self, features: jnp.ndarray, k: int, knn_metric: str, i: float,
                 sparse: bool, param_dtype=jnp.float32):
        assert not sparse, "only dense (sparse=False) path implemented"
        self.k = k
        self.knn_metric = knn_metric   # cosine hard-coded in this implementation
        self.i = i
        self.sparse = sparse
        # param_dtype=jnp.bfloat16 halves HBM traffic of the forward pass.
        self.Adj = nearest_neighbors_pre_elu(features, k, i).astype(param_dtype)

    def forward(self, h=None):
        # `h` is unused by the PyTorch module's dense forward as well.
        return fgp_learner_forward(self.Adj)


# ---------------------------------------------------------------------------
# Reference (pure JAX) for correctness check: F.elu(x) + 1
# ---------------------------------------------------------------------------
def _forward_ref(adj):
    x = adj.astype(jnp.float32)
    return jnp.where(x > 0, x, jnp.expm1(x)) + 1.0


if __name__ == "__main__":
    key = jax.random.PRNGKey(0)
    N, D, K = 16, 32, 4           # small demo: 16 nodes, 32-dim features, k=4
    features = jax.random.normal(key, (N, D), dtype=jnp.float32)

    model = FGPLearner(features, k=K, knn_metric="cosine", i=6.0, sparse=False)

    h_dummy = jax.random.normal(jax.random.PRNGKey(1), (N, D), dtype=jnp.float32)
    out = jax.block_until_ready(model.forward(h_dummy))

    ref = _forward_ref(model.Adj)
    assert out.shape == (N, N)
    assert out.dtype == jnp.float32
    assert jnp.allclose(out, ref, atol=1e-6, rtol=1e-6)

    # Multi-block 2-D grid path with explicit (clamped) tile overrides,
    # including ragged edge tiles handled via pl.cdiv masking.
    adj2 = jax.random.normal(jax.random.PRNGKey(2), (200, 200), dtype=jnp.float32)
    out2 = jax.block_until_ready(
        fgp_learner_forward(adj2, row_tile=64, col_tile=128))
    assert jnp.allclose(out2, _forward_ref(adj2), atol=1e-6, rtol=1e-6)

    # Auto-tiler path exercising the minimum-grid-steps guard (no (1,1) grid
    # collapse for mid-size matrices) with a non-square shape.
    adj3 = jax.random.normal(jax.random.PRNGKey(3), (512, 640), dtype=jnp.float32)
    out3 = jax.block_until_ready(fgp_learner_forward(adj3))
    assert jnp.allclose(out3, _forward_ref(adj3), atol=1e-6, rtol=1e-6)

    # bf16 storage path (halved HBM traffic): bf16 in, bf16 out, f32 compute.
    adj4 = jax.random.normal(jax.random.PRNGKey(4), (300, 300),
                             dtype=jnp.float32).astype(jnp.bfloat16)
    out4 = jax.block_until_ready(fgp_learner_forward(adj4))
    assert out4.dtype == jnp.bfloat16
    assert jnp.allclose(out4.astype(jnp.float32), _forward_ref(adj4),
                        atol=2e-2, rtol=2e-2)

    print("KERNEL_OK")
</pallas_src>

<mosaic_0001>
module attributes {stable_mosaic.version = 11 : i64} {
  func.func @_elu_plus_one_kernel(%arg0: i32, %arg1: i32, %arg2: memref<16x16xf32, #tpu.memory_space<vmem>>, %arg3: memref<16x16xf32, #tpu.memory_space<vmem>>) attributes {dimension_semantics = [#tpu.dimension_semantics<parallel>, #tpu.dimension_semantics<parallel>], iteration_bounds = array<i64: 1, 1>, scalar_prefetch = 0 : i64, scratch_operands = 0 : i64, tpu.core_type = #tpu.core_type<tc>, window_params = [{transform_indices = @transform_0, window_bounds = array<i64: 16, 16>}, {transform_indices = @transform_1, window_bounds = array<i64: 16, 16>}]} {
    %c0 = arith.constant 0 : index
    %c0_0 = arith.constant 0 : index
    %0 = vector.load %arg2[%c0, %c0_0] : memref<16x16xf32, #tpu.memory_space<vmem>>, vector<16x16xf32>
    %cst = arith.constant 0.000000e+00 : f32
    %1 = vector.broadcast %cst : f32 to vector<16x16xf32>
    %2 = arith.cmpf ogt, %0, %1 : vector<16x16xf32>
    %cst_1 = arith.constant 1.000000e+00 : f32
    %3 = vector.broadcast %cst_1 : f32 to vector<16x16xf32>
    %4 = arith.addf %0, %3 : vector<16x16xf32>
    %5 = math.exp %0 : vector<16x16xf32>
    %6 = arith.select %2, %4, %5 : vector<16x16xi1>, vector<16x16xf32>
    %c0_2 = arith.constant 0 : index
    %c0_3 = arith.constant 0 : index
    %7 = vector.load %arg3[%c0_2, %c0_3] : memref<16x16xf32, #tpu.memory_space<vmem>>, vector<16x16xf32>
    tpu.vector_store %arg3[%c0_2, %c0_3], %6 {strides = array<i32>} : memref<16x16xf32, #tpu.memory_space<vmem>>, vector<16x16xf32>,
    return
  }
  func.func @transform_0(%arg0: i32, %arg1: i32) -> (i32, i32) {
    %c0_i32 = arith.constant 0 : i32
    return %arg0, %arg1 : i32, i32
  }
  func.func @transform_1(%arg0: i32, %arg1: i32) -> (i32, i32) {
    %c0_i32 = arith.constant 0 : i32
    return %arg0, %arg1 : i32, i32
  }
}

</mosaic_0001>

<bundles_post_ra>
// kernel: tpu_custom_call.1
= control target key start
LH: loop header
LB: loop body
LE: loop exit
PB: predicated region body
PF: predicated region fallthrough
CT: control target
= control target key end

     0   :  { %6 = vsyncpa [#allocation3], 0  ;;  %s145_s0 = inlined_call_operand.hbm [shape: f32[16,16], index: 0, kind: input, shape index: {}]   ;;  %s146_s1 = inlined_call_operand.hbm [shape: f32[16,16], index: 1, kind: output, shape index: {}]  }
   0x1   :  { %7 = vsyncpa [#allocation4], 0  ;;  %s12_s8 = sshll.u32 %s145_s0, 4  ;;  %s119_s9 = smov [#allocation2]   ;;  %s13_s8 = int_to_ptr.hbm [resolvable:$true] %s12_s8 }
   0x2   :  { %s14_s10 = sshll.u32 %s119_s9, 4  ;;  %s120_s11 = smov 128   ;;  %s15_s10 = int_to_ptr.vmem [resolvable:$true] %s14_s10 }
   0x3   :  { %s121_s12 = smov 8  }
   0x4   :  { %20 = dma.hbm_to_vmem [thread:$0]  %s13_s8, 256, %s15_s10, [#allocation3], %s120_s11, %s120_s11, %s121_s12  }
   0x5   :  { %115 = dma.done.wait [#allocation3], 256  }
   0x6   :  { %116 = vsyncadd [#allocation3], 4294967040  ;;  %v25_v0 = vld [vmem:[#allocation2] sm:$0xff]  ;;  %v26_v1 = vld [vmem:[#allocation2 + $0x8] sm:$0xff]  ;;  %s122_s0 = smov [#allocation5]   ;;  %s46_s16 = sshll.u32 %s146_s1, 4  ;;  %s47_s16 = int_to_ptr.hbm [resolvable:$true] %s46_s16 }
   0x7   :  { %v31_v2 = vmul.f32 1.442695, %v25_v0  ;;  %v33_v3 = vmul.f32 1.442695, %v26_v1  ;;  %v29_v4 = vadd.f32 1.0, %v25_v0  ;;  %vm27_vm0 = vcmp.gt.f32.partialorder %v25_v0, 0.0 }
   0x8   :  { %v30_v5 = vadd.f32 1.0, %v26_v1  ;;  %s44_s13 = sshll.u32 %s122_s0, 4  ;;  %vm37_vm1 = vcmask 130048   ;;  %vm28_vm2 = vcmp.gt.f32.partialorder %v26_v1, 0.0  ;;  %s45_s13 = int_to_ptr.vmem [resolvable:$true] %s44_s13 }
   0x9   :  { %63 = vpow2.f32 %v31_v2 }
   0xa   :  { %65 = vpow2.f32 %v33_v3 }
   0xf   :  { %v64_v6 = vpop.eup %63 }
  0x10   :  { %v66_v7 = vpop.eup %65  ;;  %v35_v8 = vsel %vm27_vm0, %v29_v4, %v64_v6 }
  0x11   :  { %38 = vst.msk [vmem:[#allocation5] sm:$0xff] %vm37_vm1, %v35_v8  ;;  %v36_v9 = vsel %vm28_vm2, %v30_v5, %v66_v7 }
  0x12   :  { %39 = vst.msk [vmem:[#allocation5 + $0x8] sm:$0xff] %vm37_vm1, %v36_v9 }
  0x13   :  { %52 = dma.vmem_to_hbm [thread:$0]  %s45_s13, 256, %s47_s16, [#allocation4], %s120_s11, %s120_s11, %s121_s12  }
  0x14   :  { %117 = dma.done.wait [#allocation4], 256  }
  0x15   :  { %118 = vsyncadd [#allocation4], 4294967040 }
  0x16   :  { %57 = vsyncpa [#allocation3], 1 }
  0x17   :  { %58 = vsyncpa [#allocation4], 1 }

</bundles_post_ra>
